<compile_context>
chip_gen: v5e
topology: v5e:2x2
jax: 0.10.0
libtpu: 0.0.40
codegen_flags: <defaults>
</compile_context>

<pallas_src>
import math
import functools

import jax
import jax.numpy as jnp
from jax.experimental import pallas as pl
from jax.experimental.pallas import tpu as pltpu


# ---------------------------------------------------------------------------
# Pallas kernel: vp drift only.
# ---------------------------------------------------------------------------
def _vp_drift_kernel(x_ref, t_ref, drift_ref, *, beta_min, beta_max):
    # Per-row scalar math is on a (tb, 1) column and is negligible; the only
    # full-block VPU op is the broadcasted multiply -> kernel is DMA-bound.
    t = t_ref[...].astype(jnp.float32)                        # (tb, 1)
    coeff = (-0.5) * (beta_min + (beta_max - beta_min) * t)   # (tb, 1) f32
    x = x_ref[...]
    # Multiply in the input dtype (bf16 stays bf16 on v6e/v7x VALU); only the
    # tiny coefficient column is cast, not the whole block.
    drift_ref[...] = (coeff.astype(x.dtype) * x).astype(drift_ref.dtype)


# ---------------------------------------------------------------------------
# Tiling helpers.
# ---------------------------------------------------------------------------
def _round_down(x, m):
    return (x // m) * m


def _largest_dividing_tile(dim, unit, cap):
    """Largest multiple of `unit` that divides `dim` and is <= cap (or None)."""
    m = _round_down(min(dim, cap), unit)
    while m >= unit:
        if dim % m == 0:
            return m
        m -= unit
    return None


def _choose_tiles(B, D, dtype, target_block_bytes):
    """Pick (tb, td): lane-dense, preferentially dividing, ~target-sized blocks."""
    itemsize = jnp.dtype(dtype).itemsize
    pack = max(8, 32 // max(itemsize, 1))      # sublane packing: 8 / 16 / 32

    # -- feature tile (lane axis): multiple of 128, ideally dividing D -------
    lane_cap = 2048
    if D < 128:
        td = D                                  # tiny feature dim: full width
    elif D % 128 == 0:
        td = _largest_dividing_tile(D, 128, lane_cap) or 128
    else:
        # No 128-multiple divides D; keep a lane-dense tile, Pallas masks the
        # ragged final block (never fall back to a giant full-dim block).
        td = min(_round_down(D, 128), lane_cap)

    # -- batch tile (sublane axis): multiple of `pack`, ~target block bytes --
    if B < pack:
        tb = B
    else:
        tb_target = max(pack, target_block_bytes // max(td * itemsize, 1))
        tb_target = min(_round_down(tb_target, pack), _round_down(B, pack))
        tb_target = max(tb_target, pack)
        if B % pack == 0:
            # Prefer a tile that divides B (no ragged sublane edge) if one
            # exists within 2x of the target; else accept the masked edge.
            tb = _largest_dividing_tile(B, pack, tb_target)
            if tb is None or tb < max(pack, tb_target // 2):
                tb = tb_target
        else:
            tb = tb_target

    # -- v7x megacore: guarantee >= 2 grid blocks so both TCs get work -------
    def n_blocks(tb_, td_):
        return pl.cdiv(B, tb_) * pl.cdiv(D, td_)

    while n_blocks(tb, td) < 2:
        if tb >= 2 * pack and B > pack:
            tb = max(pack, _round_down(tb // 2, pack))
        elif td >= 256 and D > 128:
            td = max(128, _round_down(td // 2, 128))
        else:
            break
    return tb, td


def _chip_defaults():
    """(target_block_bytes, vmem_limit_bytes, min_pallas_bytes) per TPU gen."""
    kind = ""
    try:
        kind = jax.devices()[0].device_kind.lower()
    except Exception:
        pass
    if "v5" in kind:
        # ~820 GB/s HBM: 1 MiB blocks already amortize the ~0.35 us/step cost.
        return 1 << 20, 32 << 20, 2 << 20
    if "v6" in kind:
        return 2 << 20, 32 << 20, 2 << 20
    if "v7" in kind:
        # ~3.2 TB/s HBM: 4 MiB blocks keep per-step overhead <10%; in+out
        # double-buffered = ~16 MiB, well under the 64 MiB physical VMEM.
        return 4 << 20, 32 << 20, 4 << 20
    return 2 << 20, 32 << 20, 2 << 20


# ---------------------------------------------------------------------------
# Wrapper: DSFixedBackward forward pass.
# ---------------------------------------------------------------------------
class DSFixedBackwardPallas:
    """JAX/Pallas port of DSFixedBackward.forward.

    The PyTorch forward() calls self.sigma(x, t), which the module never
    defines; log_var(x, t) == log(sigma ** 2) is the defined equivalent, so
    forward here returns {'drift': drift(x, t), 'log_var': log_var(x, t)}.
    """
    # TODO(synk): self.sigma is undefined in the PyTorch source; using log_var() semantics.

    def __init__(self, bwd_process_type, betas, sigmas, *,
                 min_pallas_bytes=None,
                 tile_override=None,
                 target_block_bytes=None,
                 vmem_limit_bytes=None):
        self.type = bwd_process_type
        self.beta_min, self.beta_max = float(betas[0]), float(betas[1])
        self.sigma_min, self.sigma_max = float(sigmas[0]), float(sigmas[1])
        tbb, vmem, mpb = _chip_defaults()
        self.target_block_bytes = int(tbb if target_block_bytes is None else target_block_bytes)
        self.vmem_limit_bytes = int(vmem if vmem_limit_bytes is None else vmem_limit_bytes)
        self.min_pallas_bytes = int(mpb if min_pallas_bytes is None else min_pallas_bytes)
        self.tile_override = tile_override

    # --- vp pieces ---------------------------------------------------------
    def _vp_log_var(self, t):
        beta_t = self.beta_min + (self.beta_max - self.beta_min) * t
        return jnp.log(beta_t)[..., None].astype(jnp.float32)

    def _vp_drift_jnp(self, x, t):
        beta_t = self.beta_min + (self.beta_max - self.beta_min) * t
        return ((-0.5 * beta_t)[..., None] * x).astype(x.dtype)

    def _vp_drift_pallas(self, x, t):
        B, D = x.shape
        t2 = t.reshape(B, 1).astype(jnp.float32)
        if self.tile_override is not None:
            tb, td = self.tile_override
        else:
            tb, td = _choose_tiles(B, D, x.dtype, self.target_block_bytes)

        kernel = functools.partial(
            _vp_drift_kernel, beta_min=self.beta_min, beta_max=self.beta_max)
        # Feature axis (j) innermost: the (tb, 1) t block index is unchanged
        # across the inner loop, so Pallas skips re-fetching it.
        grid = (pl.cdiv(B, tb), pl.cdiv(D, td))
        return pl.pallas_call(
            kernel,
            out_shape=jax.ShapeDtypeStruct((B, D), x.dtype),
            grid=grid,
            in_specs=[
                pl.BlockSpec((tb, td), lambda i, j: (i, j)),   # x stream
                pl.BlockSpec((tb, 1), lambda i, j: (i, 0)),    # per-row t (tiny)
            ],
            out_specs=pl.BlockSpec((tb, td), lambda i, j: (i, j)),
            compiler_params=pltpu.CompilerParams(
                # Both grid axes independent -> megacore sharding on v7x.
                dimension_semantics=("parallel", "parallel"),
                # Portable explicit VMEM budget: double-buffered in+out blocks
                # stay well under this on every generation (v7x phys = 64 MiB).
                vmem_limit_bytes=self.vmem_limit_bytes,
            ),
        )(x, t2)

    # --- ve pieces ---------------------------------------------------------
    def _ve_log_var(self, t):
        ratio = self.sigma_max / self.sigma_min
        sigma_t = self.sigma_min * jnp.exp(t * math.log(ratio))
        sigma_t = sigma_t * (2.0 * math.log(ratio))
        return (2.0 * jnp.log(sigma_t))[..., None].astype(jnp.float32)

    # --- forward -----------------------------------------------------------
    def __call__(self, x, t):
        if self.type == "vp":
            B, D = x.shape
            nbytes = B * D * x.dtype.itemsize
            if nbytes < self.min_pallas_bytes:
                drift = self._vp_drift_jnp(x, t)          # small-problem fast path
            else:
                drift = self._vp_drift_pallas(x, t)
            return {"drift": drift, "log_var": self._vp_log_var(t)}
        elif self.type == "ve":
            # PyTorch drift() returns the literal 0; use a 0-d array so jit /
            # pytree handling downstream stays happy (broadcasts the same way).
            drift = jnp.zeros((), dtype=x.dtype)
            # O(B) work on a (B, 1) array: plain jnp, no Pallas launch.
            return {"drift": drift, "log_var": self._ve_log_var(t)}
        else:
            raise ValueError(f"unknown bwd_process_type: {self.type}")


# ---------------------------------------------------------------------------
# Plain-JAX references for correctness checks.
# ---------------------------------------------------------------------------
def _vp_ref(x, t, beta_min, beta_max):
    beta_t = beta_min + (beta_max - beta_min) * t
    drift = -0.5 * beta_t[..., None] * x.astype(jnp.float32)
    log_var = jnp.log(beta_t)[..., None]
    return drift, log_var


def _ve_ref(t, sigma_min, sigma_max):
    sigma_t = sigma_min * (sigma_max / sigma_min) ** t
    sigma_t = sigma_t * 2.0 * jnp.log(sigma_max / sigma_min)
    return 2.0 * jnp.log(sigma_t)[..., None]


if __name__ == "__main__":
    key = jax.random.PRNGKey(0)
    kx, kt, kx2, kt2 = jax.random.split(key, 4)

    betas = (0.1, 20.0)
    sigmas = (0.01, 50.0)

    # --- VP path: Pallas kernel with a dividing (2, 2) grid (tile_override) -
    B, D = 64, 512
    x = jax.random.normal(kx, (B, D), dtype=jnp.float32)
    t = jax.random.uniform(kt, (B,), dtype=jnp.float32, minval=0.01, maxval=0.99)
    vp = DSFixedBackwardPallas(
        "vp", betas, sigmas, min_pallas_bytes=0, tile_override=(32, 256))
    out_vp = vp(x, t)
    jax.block_until_ready(out_vp["drift"])
    jax.block_until_ready(out_vp["log_var"])
    ref_drift, ref_logvar = _vp_ref(x, t, *betas)
    assert jnp.allclose(out_vp["drift"], ref_drift, atol=1e-5, rtol=1e-5)
    assert jnp.allclose(out_vp["log_var"], ref_logvar, atol=1e-5, rtol=1e-5)

    # --- VP path: auto tiles (chip-dependent block sizing, >=2-block grid) ---
    vp_auto = DSFixedBackwardPallas("vp", betas, sigmas, min_pallas_bytes=0)
    out_auto = vp_auto(x, t)
    jax.block_until_ready(out_auto["drift"])
    assert jnp.allclose(out_auto["drift"], ref_drift, atol=1e-5, rtol=1e-5)

    # --- VP path: ragged shapes (B % 8 != 0, D % 128 != 0), auto tiles ------
    Br, Dr = 30, 200
    xr = jax.random.normal(kx2, (Br, Dr), dtype=jnp.float32)
    tr = jax.random.uniform(kt2, (Br,), dtype=jnp.float32, minval=0.01, maxval=0.99)
    out_r = vp_auto(xr, tr)
    jax.block_until_ready(out_r["drift"])
    ref_dr, ref_lvr = _vp_ref(xr, tr, *betas)
    assert jnp.allclose(out_r["drift"], ref_dr, atol=1e-5, rtol=1e-5)
    assert jnp.allclose(out_r["log_var"], ref_lvr, atol=1e-5, rtol=1e-5)

    # --- VP path: bf16 inputs (multiply stays in bf16 inside the kernel) ----
    xb = x.astype(jnp.bfloat16)
    out_b = vp_auto(xb, t)
    jax.block_until_ready(out_b["drift"])
    assert out_b["drift"].dtype == jnp.bfloat16
    assert jnp.allclose(out_b["drift"].astype(jnp.float32), ref_drift,
                        atol=3e-2, rtol=3e-2)

    # --- VP path: small-problem fast path (plain jnp, default threshold) ----
    xs, ts = x[:8, :128], t[:8]
    vp_small = DSFixedBackwardPallas("vp", betas, sigmas)
    out_s = vp_small(xs, ts)
    jax.block_until_ready(out_s["drift"])
    ref_ds, ref_lvs = _vp_ref(xs, ts, *betas)
    assert jnp.allclose(out_s["drift"], ref_ds, atol=1e-5, rtol=1e-5)
    assert jnp.allclose(out_s["log_var"], ref_lvs, atol=1e-5, rtol=1e-5)

    # --- VE path (pure jnp; drift is a 0-d zero array mirroring PyTorch's 0) -
    ve = DSFixedBackwardPallas("ve", betas, sigmas)
    out_ve = ve(x, t)
    jax.block_until_ready(out_ve["log_var"])
    ref_lv_ve = _ve_ref(t, *sigmas)
    assert out_ve["drift"].shape == () and float(out_ve["drift"]) == 0.0
    assert jnp.allclose(out_ve["log_var"], ref_lv_ve, atol=1e-4, rtol=1e-4)

    print("KERNEL_OK")
</pallas_src>

<mosaic_0001>
module attributes {stable_mosaic.version = 11 : i64} {
  func.func @_vp_drift_kernel(%arg0: i32, %arg1: i32, %arg2: memref<32x256xf32, #tpu.memory_space<vmem>>, %arg3: memref<32x1xf32, #tpu.memory_space<vmem>>, %arg4: memref<32x256xf32, #tpu.memory_space<vmem>>) attributes {dimension_semantics = [#tpu.dimension_semantics<parallel>, #tpu.dimension_semantics<parallel>], iteration_bounds = array<i64: 2, 2>, scalar_prefetch = 0 : i64, scratch_operands = 0 : i64, tpu.core_type = #tpu.core_type<tc>, window_params = [{transform_indices = @transform_0, window_bounds = array<i64: 32, 256>}, {transform_indices = @transform_1, window_bounds = array<i64: 32, 1>}, {transform_indices = @transform_2, window_bounds = array<i64: 32, 256>}]} {
    %c0 = arith.constant 0 : index
    %c0_0 = arith.constant 0 : index
    %0 = vector.load %arg3[%c0, %c0_0] : memref<32x1xf32, #tpu.memory_space<vmem>>, vector<32x1xf32>
    %cst = arith.constant 1.990000e+01 : f32
    %1 = vector.broadcast %cst : f32 to vector<32x1xf32>
    %2 = arith.mulf %1, %0 : vector<32x1xf32>
    %cst_1 = arith.constant 1.000000e-01 : f32
    %3 = vector.broadcast %cst_1 : f32 to vector<32x1xf32>
    %4 = arith.addf %3, %2 : vector<32x1xf32>
    %cst_2 = arith.constant -5.000000e-01 : f32
    %5 = vector.broadcast %cst_2 : f32 to vector<32x1xf32>
    %6 = arith.mulf %5, %4 : vector<32x1xf32>
    %c0_3 = arith.constant 0 : index
    %c0_4 = arith.constant 0 : index
    %7 = vector.load %arg2[%c0_3, %c0_4] : memref<32x256xf32, #tpu.memory_space<vmem>>, vector<32x256xf32>
    %8 = vector.broadcast %6 : vector<32x1xf32> to vector<32x256xf32>
    %9 = arith.mulf %8, %7 : vector<32x256xf32>
    %c0_5 = arith.constant 0 : index
    %c0_6 = arith.constant 0 : index
    %10 = vector.load %arg4[%c0_5, %c0_6] : memref<32x256xf32, #tpu.memory_space<vmem>>, vector<32x256xf32>
    tpu.vector_store %arg4[%c0_5, %c0_6], %9 {strides = array<i32>} : memref<32x256xf32, #tpu.memory_space<vmem>>, vector<32x256xf32>,
    return
  }
  func.func @transform_0(%arg0: i32, %arg1: i32) -> (i32, i32) {
    %c0_i32 = arith.constant 0 : i32
    return %arg0, %arg1 : i32, i32
  }
  func.func @transform_1(%arg0: i32, %arg1: i32) -> (i32, i32) {
    %c0_i32 = arith.constant 0 : i32
    %c0_i32_0 = arith.constant 0 : i32
    return %arg0, %c0_i32 : i32, i32
  }
  func.func @transform_2(%arg0: i32, %arg1: i32) -> (i32, i32) {
    %c0_i32 = arith.constant 0 : i32
    return %arg0, %arg1 : i32, i32
  }
}

</mosaic_0001>

<bundles_post_ra>
// kernel: tpu_custom_call.1
= control target key start
LH: loop header
LB: loop body
LE: loop exit
PB: predicated region body
PF: predicated region fallthrough
CT: control target
= control target key end

     0   :  { %7 = vsyncpa [#allocation3], 0  ;;  %s812_s0 = inlined_call_operand.hbm [shape: f32[64,512], index: 0, kind: input, shape index: {}]   ;;  %s813_s1 = inlined_call_operand.vmem [shape: f32[64,1], index: 1, kind: input, shape index: {}]   ;;  %s814_s2 = inlined_call_operand.hbm [shape: f32[64,512], index: 2, kind: output, shape index: {}]  }
   0x1   :  { %9 = vsyncpa [#allocation3 + $0x1], 0 }
   0x2   :  { %10 = vsyncpa [#allocation4], 0 }
   0x3   :  { %12 = vsyncpa [#allocation4 + $0x1], 0  ;;  %s652_s9 = smov 0   ;;  %s654_s10 = smov 0  }
   0x4   :  { %s656_s11 = smov 0   ;;  %s658_s12 = smov 0  }
   0x5   :  { %s660_s13 = smov 0   ;;  %s662_s14 = smov 0  }
   0x6   :  { %s664_s15 = smov 0   ;;  %s666_s16 = smov 0  }
   0x7 LB: > { %818 = sst [smem:[#allocation8_spill]] %s620_s14  ;;  %s390_s17 = sadd.s32 4294967295, %s628_s16   ;;  %s628_s16 = sphi %s666_s16, %s18_s16   ;;  %s624_s15 = sphi %s664_s15, %s832_s15   ;;  %s620_s14 = sphi %s662_s14, %s826_s14   ;;  %s616_s13 = sphi %s660_s13, %s831_s13   ;;  %s612_s12 = sphi %s658_s12, %s825_s12   ;;  %s608_s11 = sphi %s656_s11, %s830_s11   ;;  %s604_s10 = sphi %s654_s10, %s829_s10   ;;  %s600_s9 = sphi %s652_s9, %s828_s9  }
   0x8   : > { %s391_s18 = sadd.s32 4294967294, %s628_s16   ;;  %s27_s19 = sadd.s32 1, %s620_s14 }
   0x9   : > { %s30_s20 = sadd.s32 1, %s624_s15  ;;  %p28_p0 = scmp.ge.s32.totalorder %s27_s19, 2 }
   0xa   : > { %s39_s21 = sadd.s32 1, %s608_s11  ;;  %p46_p1 = scmp.ne.s32.totalorder %s608_s11, %s604_s10 }
   0xb   : > { %p47_p2 = scmp.eq.s32.totalorder %s628_s16, 0  ;;  %s834_s19 = smov (%p28_p0, %s27_s19), 0 }
   0xc   : > { %819 = sst [smem:[#allocation9_spill]] %s834_s19  ;;  %s836_s20 = smov (!%p28_p0, %s30_s20), %s624_s15 }
   0xd   : > { %s35_s22 = ssub.s32 %s620_s14, %s834_s19  ;;  %p705_p3 = por %p47_p2, %p46_p1 }
   0xe   : > { %p32_p4 = scmp.ge.s32.totalorder %s836_s20, 2  ;;  %p52_p5 = scmp.ne.s32.totalorder %s604_s10, %s600_s9 }
   0xf   : > { %p53_p6 = scmp.eq.s32.totalorder %s390_s17, 0  ;;  %p104_p7 = scmp.eq.s32.totalorder %s390_s17, 3 }
  0x10   : > { %s838_s20 = smov (%p32_p4, %s836_s20), 0  ;;  %p110_p10 = scmp.eq.s32.totalorder %s391_s18, 3 }
  0x11   : > { %821 = sst [smem:[#allocation10_spill]] %s838_s20  ;;  %p713_p8 = por %p53_p6, %p52_p5 }
  0x12   : > { %p717_p9 = por %p104_p7, %p46_p1  ;;  %s34_s26 = ssub.s32 %s624_s15, %s838_s20 }
  0x13   : > { %s36_s27 = sor.u32 %s35_s22, %s34_s26  ;;  %p723_p12 = por %p110_p10, %p52_p5 }
  0x14   : > { %p37_p11 = scmp.eq.s32.totalorder %s36_s27, 0  ;;  %p425_p13 = scmp.lt.s32.totalorder %s628_s16, 4 }
  0x15   : > { %s130_s29 = sand.u32 1, %s608_s11   ;;  %s396_s4 = sshll.u32 %s620_s14, 1 }
  0x16   : > { %s730_s30 = scalar_select %p37_p11, %s608_s11, %s39_s21  }
  0x17   : > { %s394_s3 = sshll.u32 %s130_s29, 6  ;;  %s411_s5 = sshll.u32 %s624_s15, 4 }
  0x18   : > { %s134_s6 = scalar_lea.vmem [#allocation2], %s394_s3  ;;  %s140_s8 = sadd.s32 %s411_s5, %s396_s4 }
  0x19   : > { %s145_s7 = sshll.u32 %s134_s6, 4  ;;  %s398_s17 = sshll.u32 %s140_s8, 3  ;;  %s146_s7 = int_to_ptr.vmem [resolvable:$true] %s145_s7 }
  0x1a   : > { %p418_p0 = pnand %p425_p13, %p705_p3  ;;  %s142_s26 = scalar_lea.hbm %s812_s0, %s398_s17 }
  0x1b   : > { %s143_s27 = sshll.u32 %s142_s26, 4  ;;  %p399_p1 = scmp.ge.s32.totalorder %s628_s16, 1  ;;  %s144_s27 = int_to_ptr.hbm [resolvable:$true] %s143_s27 }
  0x1c   : > { %s131_s21 = scalar_lea.sflag [#allocation3], %s130_s29  ;;  %s630_s20 = smov 512  }
  0x1d   : > { %s631_s19 = smov 256   ;;  %s632_s14 = smov 16  }
  0x1e   : > { %420 = dma.hbm_to_vmem [thread:$0]  (!%p418_p0), %s144_s27, 1024, %s146_s7, %s131_s21, %s630_s20, %s631_s19, %s632_s14  }
  0x1f   : > { %p162_p2 = scmp.lt.s32.totalorder %s628_s16, 5 }
  0x21   : > { %p163_p4 = pnand %p399_p1, %p162_p2 }
  0x22   : > { %s742_s3 = sand.u32 (!%p163_p4), 1, %s604_s10  }
  0x23   : > { %166 = sbr.rel (%p163_p4) target bundleno = 187 (0xbb), region = 28  ;;  %s400_s23 = sshll.u32 (!%p163_p4), %s742_s3, 6 }
  0x24   : > { %s169_s4 = scalar_lea.sflag (!%p163_p4), [#allocation3], %s742_s3  ;;  %s748_s5 = scalar_lea.vmem (!%p163_p4), [#allocation2], %s400_s23 }
  0x28   : > { %591 = dma.done.wait (%p713_p8), %s169_s4, 1024  }
  0x29   : > { %593 = vsyncadd (%p713_p8), %s169_s4, 4294966272  ;;  %s402_s14 = sshll.u32 %s616_s13, 2  ;;  %v633_v0 = vmov 0   ;;  %s406_s24 = sshll.u32 %s612_s12, 1  ;;  %v229_v17 = vld [vmem:[%s748_s5 + $0x20] sm:$0xff]  ;;  %v230_v18 = vld [vmem:[%s748_s5 + $0x28] sm:$0xff] }
  0x2a   : > { %499 = vset.pattern.permute.xlu1 %v633_v0  ;;  %498 = vset.pattern.permute.xlu0 %v633_v0  ;;  %p202_p3 = scmp.lt.s32.totalorder %s402_s14, 7  ;;  %s412_s7 = sshll.u32 %s616_s13, 4  ;;  %v225_v19 = vld [vmem:[%s748_s5] sm:$0xff]  ;;  %v226_v20 = vld [vmem:[%s748_s5 + $0x8] sm:$0xff]  ;;  %v231_v27 = vld [vmem:[%s748_s5 + $0x30] sm:$0xff] }
  0x2b   : > { %s282_s8 = sadd.s32 %s412_s7, %s406_s24  ;;  %s198_s18 = scalar_lea.vmem [#allocation5], %s400_s23  ;;  %v232_v28 = vld [vmem:[%s748_s5 + $0x38] sm:$0xff]  ;;  %v227_v29 = vld [vmem:[%s748_s5 + $0x10] sm:$0xff] }
  0x2c   : > { %s840_s14 = smov (!%p202_p3, %s402_s14), 7  ;;  %s408_s17 = sshll.u32 %s282_s8, 3  ;;  %v228_v30 = vld [vmem:[%s748_s5 + $0x18] sm:$0xff] }
  0x2d   : > { %s403_s19 = sshll.u32 %s840_s14, 3  ;;  %s284_s22 = scalar_lea.hbm %s814_s2, %s408_s17 }
  0x2e   : > { %s205_s6 = scalar_lea.vmem %s813_s1, %s403_s19  ;;  %s285_s26 = sshll.u32 %s198_s18, 4  ;;  %s286_s26 = int_to_ptr.vmem [resolvable:$true] %s285_s26 }
  0x2f   : > { %v211_v1 = vld [vmem:[%s205_s6 + $0x10] sm:$0xff]  ;;  %v209_v2 = vld [vmem:[%s205_s6] sm:$0xff]  ;;  %v212_v3 = vld [vmem:[%s205_s6 + $0x18] sm:$0xff]  ;;  %s287_s27 = sshll.u32 %s284_s22, 4  ;;  %s270_s21 = scalar_lea.sflag [#allocation4], %s742_s3  ;;  %s288_s27 = int_to_ptr.hbm [resolvable:$true] %s287_s27 }
  0x30   : > { %v215_v4 = vmul.f32 19.9, %v211_v1  ;;  %v213_v5 = vmul.f32 19.9, %v209_v2  ;;  %v210_v6 = vld [vmem:[%s205_s6 + $0x8] sm:$0xff]  ;;  %s544_s23 = sshra.s32 %s288_s27, 4  ;;  %s545_s23 = int_to_ptr.hbm [resolvable:$true] %s544_s23 }
  0x31   : > { %v216_v9 = vmul.f32 19.9, %v212_v3  ;;  %v214_v10 = vmul.f32 19.9, %v210_v6  ;;  %s546_s4 = scalar_lea.hbm %s545_s23, 64  ;;  %s550_s19 = scalar_lea.hbm %s814_s2, 256 }
  0x32   : > { %v219_v7 = vadd.f32 0.1, %v215_v4  ;;  %v217_v8 = vadd.f32 0.1, %v213_v5  ;;  %p547_p5 = scmp.ne.s32.totalorder %s545_s23, %s546_s4  ;;  %p551_p8 = scmp.lt.s32.totalorder %s545_s23, %s814_s2 }
  0x33   : > { %v220_v13 = vadd.f32 0.1, %v216_v9  ;;  %v218_v14 = vadd.f32 0.1, %v214_v10  ;;  %p552_p10 = scmp.lt.s32.totalorder %s550_s19, %s546_s4 }
  0x34   : > { %v223_v11 = vmul.f32 -0.5, %v219_v7  ;;  %v221_v12 = vmul.f32 -0.5, %v217_v8  ;;  %p548_p6 = pnand %p547_p5, %p717_p9 }
  0x35   : > { %v224_v15 = vmul.f32 -0.5, %v220_v13  ;;  %v222_v16 = vmul.f32 -0.5, %v218_v14  ;;  %p553_p11 = por %p552_p10, %p551_p8 }
  0x36   : > { %245 = vperm.xlu1 %499, %v223_v11   ;;  %235 = vperm.xlu0 %498, %v221_v12   ;;  %p549_p7 = pneg %p548_p6 }
  0x38   : > { %p554_p13 = pnand %p553_p11, %p549_p7 }
  0x3e   : > { %250 = vperm.xlu1 %499, %v224_v15   ;;  %240 = vperm.xlu0 %498, %v222_v16  }
  0xa8   : > { %v246_v21 = vpop.permute.xlu1 %245  ;;  %v236_v22 = vpop.permute.xlu0 %235 }
  0xa9   : > { %v257_v23 = vmul.f32 %v246_v21, %v229_v17  ;;  %v258_v24 = vmul.f32 %v246_v21, %v230_v18  ;;  %v253_v25 = vmul.f32 %v236_v22, %v225_v19  ;;  %v254_v26 = vmul.f32 %v236_v22, %v226_v20 }
  0xab   : > { %265 = vst [vmem:[%s198_s18 + $0x20] sm:$0xff] %v257_v23 }
  0xac   : > { %266 = vst [vmem:[%s198_s18 + $0x28] sm:$0xff] %v258_v24 }
  0xad   : > { %261 = vst [vmem:[%s198_s18] sm:$0xff] %v253_v25 }
  0xae   : > { %262 = vst [vmem:[%s198_s18 + $0x8] sm:$0xff] %v254_v26 }
  0xb0   : > { %v251_v31 = vpop.permute.xlu1 %250  ;;  %v241_v32 = vpop.permute.xlu0 %240 }
  0xb1   : > { %v259_v33 = vmul.f32 %v251_v31, %v231_v27  ;;  %v260_v34 = vmul.f32 %v251_v31, %v232_v28  ;;  %v255_v35 = vmul.f32 %v241_v32, %v227_v29  ;;  %v256_v36 = vmul.f32 %v241_v32, %v228_v30 }
  0xb3   : > { %267 = vst [vmem:[%s198_s18 + $0x30] sm:$0xff] %v259_v33 }
  0xb4   : > { %268 = vst [vmem:[%s198_s18 + $0x38] sm:$0xff] %v260_v34 }
  0xb5   : > { %263 = vst [vmem:[%s198_s18 + $0x10] sm:$0xff] %v255_v35 }
  0xb6   : > { %264 = vst [vmem:[%s198_s18 + $0x18] sm:$0xff] %v256_v36 }
  0xb7   : > { %557 = shalt.err (!%p554_p13)
}
  0xb8   : > { %s634_s3 = smov 256   ;;  %s635_s6 = smov 512  }
  0xb9   : > { %s636_s24 = smov 16  }
  0xba   : > { %415 = dma.vmem_to_hbm [thread:$0]  (%p717_p9), %s286_s26, 1024, %s288_s27, %s270_s21, %s634_s3, %s635_s6, %s636_s24  }
  0xbb PF: > { %p426_p0 = scmp.ge.s32.totalorder %s628_s16, 2  ;;  %s302_s7 = sand.u32 1, %s600_s9  }
  0xbc   : > { %s303_s8 = scalar_lea.sflag [#allocation4], %s302_s7 }
  0xbd   : > { %p422_p1 = pnand %p426_p0, %p723_p12 }
  0xbf   : > { %p423_p2 = pneg %p422_p1 }
  0xc1   : > { %595 = dma.done.wait (%p423_p2), %s303_s8, 1024  }
  0xc2   : > { %597 = vsyncadd (%p423_p2), %s303_s8, 4294966272  ;;  %s18_s16 = sadd.s32 1, %s628_s16   ;;  %s825_s12 = sld [smem:[#allocation8_spill]] }
  0xc3   : > { %p15_p4 = scmp.ge.s32.totalorder %s18_s16, 6   ;;  %s826_s14 = sld [smem:[#allocation9_spill]] }
  0xc4   : > { %s827_s25 = sld [smem:[#allocation10_spill]]  ;;  %s828_s9 = smov %s604_s10 }
  0xc5   : > { %s829_s10 = smov %s608_s11  ;;  %s830_s11 = smov %s730_s30 }
  0xc6   : > { %s831_s13 = smov %s624_s15  ;;  %17 = sbr.rel (!%p15_p4) target bundleno = 7 (0x7), region = 76 }
  0xca   : > { %s832_s15 = smov %s827_s25 }
  0xcb   :  { %309 = vsyncpa [#allocation3], 1 }
  0xcc   :  { %311 = vsyncpa [#allocation3 + $0x1], 1 }
  0xcd   :  { %312 = vsyncpa [#allocation4], 1 }
  0xce   :  { %314 = vsyncpa [#allocation4 + $0x1], 1 }

</bundles_post_ra>
